<compile_context>
chip_gen: v7x
topology: tpu7x:2x2x1
jax: 0.10.0
libtpu: 0.0.40
codegen_flags: <defaults>
</compile_context>

<pallas_src>
import functools
import math

import jax
import jax.numpy as jnp
import numpy as np
from jax.experimental import pallas as pl
from jax.experimental.pallas import tpu as pltpu

MASK_VALUE = -1e10  # same constant PyTorch uses: w*b + (-1e10)*(1-b)


# --------------------------------------------------------------------------- #
# Pallas kernel: one (batch, head) slice per grid step
# --------------------------------------------------------------------------- #
def attention_kernel(q_ref, k_ref, kr_ref, v_ref, a_ref, att_ref, *,
                     inv_scale, causal, offset):
    q = q_ref[...]                                   # (Tq, hd) compute dtype (bf16)

    # Fuse q@k + q@k_r into a single MXU matmul: q @ (k + k_r).
    # Fold the 1/sqrt(hd) scale into this f32 elementwise prep (Tk*hd ops, not Tq*Tk).
    kk = ((k_ref[...].astype(jnp.float32) + kr_ref[...].astype(jnp.float32))
          * inv_scale).astype(q.dtype)               # (Tk, hd)

    # Scores: NT matmul on the MXU (contract over hd), f32 accumulation.
    s = jax.lax.dot_general(q, kk, (((1,), (1,)), ((), ())),
                            preferred_element_type=jnp.float32)   # (Tq, Tk)

    if causal:
        # bias[:, :, ns-nd:ns, :ns] of a tril mask  <=>  col <= row + (Tk - Tq)
        row = jax.lax.broadcasted_iota(jnp.int32, s.shape, 0)
        col = jax.lax.broadcasted_iota(jnp.int32, s.shape, 1)
        s = jnp.where(col <= row + offset, s, MASK_VALUE)

    # Numerically-stable softmax in f32; reciprocal goes to the EUP slot (approx).
    m = jnp.max(s, axis=-1, keepdims=True)
    e = jnp.exp(s - m)
    denom = jnp.sum(e, axis=-1, keepdims=True)
    att = e * pl.reciprocal(denom, approx=True)      # (Tq, Tk) f32
    att_ref[...] = att.astype(att_ref.dtype)

    # Output: att @ v on the MXU (bf16 operands, f32 accumulation).
    a = jnp.dot(att.astype(v_ref.dtype), v_ref[...],
                preferred_element_type=jnp.float32)  # (Tq, hd)
    a_ref[...] = a.astype(a_ref.dtype)


# --------------------------------------------------------------------------- #
# Wrapper (split_heads / merge_heads are layout plumbing outside the kernel)
# --------------------------------------------------------------------------- #
def attention_forward(query, key, value, key_r, *, n_head, n_ctx, masked_lm,
                      compute_dtype=jnp.bfloat16):
    B, _, C = query.shape
    assert C % n_head == 0
    hd = C // n_head
    Tk = key.shape[1]

    def split_heads(x):
        T = x.shape[1]
        # [B, T, C] -> [B, H, T, hd]
        return x.reshape(B, T, n_head, hd).transpose(0, 2, 1, 3).astype(compute_dtype)

    q = split_heads(query)[:, :, -n_ctx:, :]
    k = split_heads(key)        # kept as [B, H, Tk, hd]; kernel contracts over hd (NT matmul)
    kr = split_heads(key_r)
    v = split_heads(value)
    Tq = q.shape[2]

    kernel = functools.partial(
        attention_kernel,
        inv_scale=1.0 / math.sqrt(hd),
        causal=not masked_lm,
        offset=Tk - Tq,
    )

    def bh_spec(t, d):
        # one (batch, head) slice per grid step; trailing block dims == full array dims
        return pl.BlockSpec((None, None, t, d), lambda b, h: (b, h, 0, 0))

    a_heads, att = pl.pallas_call(
        kernel,
        out_shape=(
            jax.ShapeDtypeStruct((B, n_head, Tq, hd), jnp.float32),
            jax.ShapeDtypeStruct((B, n_head, Tq, Tk), jnp.float32),
        ),
        grid_spec=pltpu.PrefetchScalarGridSpec(
            num_scalar_prefetch=0,
            grid=(B, n_head),
            in_specs=[bh_spec(Tq, hd), bh_spec(Tk, hd), bh_spec(Tk, hd), bh_spec(Tk, hd)],
            out_specs=(bh_spec(Tq, hd), bh_spec(Tq, Tk)),
        ),
        compiler_params=pltpu.CompilerParams(
            dimension_semantics=("parallel", "parallel")),
    )(q, k, kr, v)

    # merge_heads: [B, H, Tq, hd] -> [B, Tq, H*hd]
    a = a_heads.transpose(0, 2, 1, 3).reshape(B, Tq, C)
    return a, att


# --------------------------------------------------------------------------- #
# Pure-JAX f32 reference mirroring the PyTorch forward
# --------------------------------------------------------------------------- #
def reference_attention(query, key, value, key_r, *, n_head, n_ctx, masked_lm):
    B, _, C = query.shape
    hd = C // n_head

    def split_heads(x, k=False):
        T = x.shape[1]
        x = x.reshape(B, T, n_head, hd)
        return x.transpose(0, 2, 3, 1) if k else x.transpose(0, 2, 1, 3)

    q = split_heads(query)[:, :, -n_ctx:, :]
    k = split_heads(key, k=True)
    kr = split_heads(key_r, k=True)
    v = split_heads(value)

    w = jnp.matmul(q, k) + jnp.matmul(q, kr)
    w = w / math.sqrt(v.shape[-1])
    if not masked_lm:
        nd, ns = w.shape[-2], w.shape[-1]
        bias = jnp.tril(jnp.ones((n_ctx, n_ctx), jnp.float32)).reshape(1, 1, n_ctx, n_ctx)
        b = bias[:, :, ns - nd:ns, :ns]
        w = w * b + MASK_VALUE * (1 - b)
    att = jax.nn.softmax(w, axis=-1)
    a = jnp.matmul(att, v)
    a = a.transpose(0, 2, 1, 3).reshape(B, -1, C)
    return a, att


# --------------------------------------------------------------------------- #
if __name__ == "__main__":
    # module hyper-parameters (small, consistent with the module)
    B, n_ctx, n_embd, n_head = 2, 16, 64, 4    # head dim = 16
    masked_lm = False                          # exercise the causal-mask branch

    key = jax.random.PRNGKey(0)
    kq, kk_, kv, kr_ = jax.random.split(key, 4)
    query = jax.random.normal(kq, (B, n_ctx, n_embd), jnp.float32)
    key_in = jax.random.normal(kk_, (B, n_ctx, n_embd), jnp.float32)
    value = jax.random.normal(kv, (B, n_ctx, n_embd), jnp.float32)
    key_r = jax.random.normal(kr_, (B, n_ctx, n_embd), jnp.float32)

    a, att = attention_forward(query, key_in, value, key_r,
                               n_head=n_head, n_ctx=n_ctx, masked_lm=masked_lm)
    a = jax.block_until_ready(a)
    att = jax.block_until_ready(att)

    a_ref, att_ref = reference_attention(query, key_in, value, key_r,
                                         n_head=n_head, n_ctx=n_ctx, masked_lm=masked_lm)
    a_ref = jax.block_until_ready(a_ref)

    # bf16 MXU operands with f32 accumulation -> a few e-3 error; 3e-2 tolerance is comfortable.
    np.testing.assert_allclose(np.asarray(att), np.asarray(att_ref), rtol=3e-2, atol=3e-2)
    np.testing.assert_allclose(np.asarray(a), np.asarray(a_ref), rtol=3e-2, atol=3e-2)
    print("KERNEL_OK")
</pallas_src>

<mosaic_0001>
module attributes {stable_mosaic.version = 11 : i64} {
  func.func @attention_kernel(%arg0: i32, %arg1: i32, %arg2: memref<1x1x16x16xbf16, #tpu.memory_space<vmem>>, %arg3: memref<1x1x16x16xbf16, #tpu.memory_space<vmem>>, %arg4: memref<1x1x16x16xbf16, #tpu.memory_space<vmem>>, %arg5: memref<1x1x16x16xbf16, #tpu.memory_space<vmem>>, %arg6: memref<1x1x16x16xf32, #tpu.memory_space<vmem>>, %arg7: memref<1x1x16x16xf32, #tpu.memory_space<vmem>>) attributes {dimension_semantics = [#tpu.dimension_semantics<parallel>, #tpu.dimension_semantics<parallel>], iteration_bounds = array<i64: 2, 4>, scalar_prefetch = 0 : i64, scratch_operands = 0 : i64, tpu.core_type = #tpu.core_type<tc>, window_params = [{transform_indices = @transform_0, window_bounds = array<i64: 1, 1, 16, 16>}, {transform_indices = @transform_1, window_bounds = array<i64: 1, 1, 16, 16>}, {transform_indices = @transform_2, window_bounds = array<i64: 1, 1, 16, 16>}, {transform_indices = @transform_3, window_bounds = array<i64: 1, 1, 16, 16>}, {transform_indices = @transform_4, window_bounds = array<i64: 1, 1, 16, 16>}, {transform_indices = @transform_5, window_bounds = array<i64: 1, 1, 16, 16>}]} {
    %c0 = arith.constant 0 : index
    %c0_0 = arith.constant 0 : index
    %c0_1 = arith.constant 0 : index
    %c0_2 = arith.constant 0 : index
    %0 = vector.load %arg2[%c0, %c0_0, %c0_1, %c0_2] : memref<1x1x16x16xbf16, #tpu.memory_space<vmem>>, vector<1x1x16x16xbf16>
    %1 = vector.shape_cast %0 : vector<1x1x16x16xbf16> to vector<16x16xbf16>
    %c0_3 = arith.constant 0 : index
    %c0_4 = arith.constant 0 : index
    %c0_5 = arith.constant 0 : index
    %c0_6 = arith.constant 0 : index
    %2 = vector.load %arg3[%c0_3, %c0_4, %c0_5, %c0_6] : memref<1x1x16x16xbf16, #tpu.memory_space<vmem>>, vector<1x1x16x16xbf16>
    %3 = vector.shape_cast %2 : vector<1x1x16x16xbf16> to vector<16x16xbf16>
    %4 = arith.extf %3 : vector<16x16xbf16> to vector<16x16xf32>
    %c0_7 = arith.constant 0 : index
    %c0_8 = arith.constant 0 : index
    %c0_9 = arith.constant 0 : index
    %c0_10 = arith.constant 0 : index
    %5 = vector.load %arg4[%c0_7, %c0_8, %c0_9, %c0_10] : memref<1x1x16x16xbf16, #tpu.memory_space<vmem>>, vector<1x1x16x16xbf16>
    %6 = vector.shape_cast %5 : vector<1x1x16x16xbf16> to vector<16x16xbf16>
    %7 = arith.extf %6 : vector<16x16xbf16> to vector<16x16xf32>
    %8 = arith.addf %4, %7 : vector<16x16xf32>
    %cst = arith.constant 2.500000e-01 : f32
    %9 = vector.broadcast %cst : f32 to vector<16x16xf32>
    %10 = arith.mulf %8, %9 : vector<16x16xf32>
    %11 = arith.truncf %10 : vector<16x16xf32> to vector<16x16xbf16>
    %cst_11 = arith.constant dense<0.000000e+00> : vector<16x16xf32>
    %12 = tpu.matmul %1, %11, %cst_11 {dimension_numbers = #tpu.dot_dimension_numbers<[1], [1], [0], [0], [0, 0, 1, 0], [], []>} : vector<16x16xbf16>, vector<16x16xbf16>, vector<16x16xf32> -> vector<16x16xf32>
    %13 = tpu.iota {dimensions = array<i32: 0>} : vector<16x16xi32>
    %14 = tpu.iota {dimensions = array<i32: 1>} : vector<16x16xi32>
    %c0_i32 = arith.constant 0 : i32
    %15 = vector.broadcast %c0_i32 : i32 to vector<16x16xi32>
    %16 = arith.addi %13, %15 : vector<16x16xi32>
    %17 = arith.cmpi sle, %14, %16 : vector<16x16xi32>
    %cst_12 = arith.constant -1.000000e+10 : f32
    %18 = vector.broadcast %cst_12 : f32 to vector<16x16xf32>
    %19 = arith.select %17, %12, %18 : vector<16x16xi1>, vector<16x16xf32>
    %cst_13 = arith.constant dense<0xFF800000> : vector<16xf32>
    %20 = vector.multi_reduction <maximumf>, %19, %cst_13 [1] : vector<16x16xf32> to vector<16xf32>
    %21 = vector.shape_cast %20 : vector<16xf32> to vector<16x1xf32>
    %22 = vector.broadcast %21 : vector<16x1xf32> to vector<16x16xf32>
    %23 = arith.subf %19, %22 : vector<16x16xf32>
    %24 = math.exp %23 : vector<16x16xf32>
    %cst_14 = arith.constant dense<0.000000e+00> : vector<16xf32>
    %25 = vector.multi_reduction <add>, %24, %cst_14 [1] : vector<16x16xf32> to vector<16xf32>
    %26 = vector.shape_cast %25 : vector<16xf32> to vector<16x1xf32>
    %27 = tpu.reciprocal %26 {approx = true} : vector<16x1xf32> -> vector<16x1xf32>
    %28 = vector.broadcast %27 : vector<16x1xf32> to vector<16x16xf32>
    %29 = arith.mulf %24, %28 : vector<16x16xf32>
    %c0_15 = arith.constant 0 : index
    %c0_16 = arith.constant 0 : index
    %c0_17 = arith.constant 0 : index
    %c0_18 = arith.constant 0 : index
    %30 = vector.load %arg7[%c0_15, %c0_16, %c0_17, %c0_18] : memref<1x1x16x16xf32, #tpu.memory_space<vmem>>, vector<1x1x16x16xf32>
    %31 = vector.shape_cast %30 : vector<1x1x16x16xf32> to vector<16x16xf32>
    %32 = vector.shape_cast %29 : vector<16x16xf32> to vector<1x1x16x16xf32>
    tpu.vector_store %arg7[%c0_15, %c0_16, %c0_17, %c0_18], %32 {strides = array<i32>} : memref<1x1x16x16xf32, #tpu.memory_space<vmem>>, vector<1x1x16x16xf32>,
    %33 = arith.truncf %29 : vector<16x16xf32> to vector<16x16xbf16>
    %c0_19 = arith.constant 0 : index
    %c0_20 = arith.constant 0 : index
    %c0_21 = arith.constant 0 : index
    %c0_22 = arith.constant 0 : index
    %34 = vector.load %arg5[%c0_19, %c0_20, %c0_21, %c0_22] : memref<1x1x16x16xbf16, #tpu.memory_space<vmem>>, vector<1x1x16x16xbf16>
    %35 = vector.shape_cast %34 : vector<1x1x16x16xbf16> to vector<16x16xbf16>
    %cst_23 = arith.constant dense<0.000000e+00> : vector<16x16xf32>
    %36 = tpu.matmul %33, %35, %cst_23 {dimension_numbers = #tpu.dot_dimension_numbers<[1], [0], [0], [1], [0, 0, 1, 1], [], []>} : vector<16x16xbf16>, vector<16x16xbf16>, vector<16x16xf32> -> vector<16x16xf32>
    %c0_24 = arith.constant 0 : index
    %c0_25 = arith.constant 0 : index
    %c0_26 = arith.constant 0 : index
    %c0_27 = arith.constant 0 : index
    %37 = vector.load %arg6[%c0_24, %c0_25, %c0_26, %c0_27] : memref<1x1x16x16xf32, #tpu.memory_space<vmem>>, vector<1x1x16x16xf32>
    %38 = vector.shape_cast %37 : vector<1x1x16x16xf32> to vector<16x16xf32>
    %39 = vector.shape_cast %36 : vector<16x16xf32> to vector<1x1x16x16xf32>
    tpu.vector_store %arg6[%c0_24, %c0_25, %c0_26, %c0_27], %39 {strides = array<i32>} : memref<1x1x16x16xf32, #tpu.memory_space<vmem>>, vector<1x1x16x16xf32>,
    return
  }
  func.func @transform_0(%arg0: i32, %arg1: i32) -> (i32, i32, i32, i32) {
    %c0_i32 = arith.constant 0 : i32
    %c0_i32_0 = arith.constant 0 : i32
    %c0_i32_1 = arith.constant 0 : i32
    return %arg0, %arg1, %c0_i32, %c0_i32_0 : i32, i32, i32, i32
  }
  func.func @transform_1(%arg0: i32, %arg1: i32) -> (i32, i32, i32, i32) {
    %c0_i32 = arith.constant 0 : i32
    %c0_i32_0 = arith.constant 0 : i32
    %c0_i32_1 = arith.constant 0 : i32
    return %arg0, %arg1, %c0_i32, %c0_i32_0 : i32, i32, i32, i32
  }
  func.func @transform_2(%arg0: i32, %arg1: i32) -> (i32, i32, i32, i32) {
    %c0_i32 = arith.constant 0 : i32
    %c0_i32_0 = arith.constant 0 : i32
    %c0_i32_1 = arith.constant 0 : i32
    return %arg0, %arg1, %c0_i32, %c0_i32_0 : i32, i32, i32, i32
  }
  func.func @transform_3(%arg0: i32, %arg1: i32) -> (i32, i32, i32, i32) {
    %c0_i32 = arith.constant 0 : i32
    %c0_i32_0 = arith.constant 0 : i32
    %c0_i32_1 = arith.constant 0 : i32
    return %arg0, %arg1, %c0_i32, %c0_i32_0 : i32, i32, i32, i32
  }
  func.func @transform_4(%arg0: i32, %arg1: i32) -> (i32, i32, i32, i32) {
    %c0_i32 = arith.constant 0 : i32
    %c0_i32_0 = arith.constant 0 : i32
    %c0_i32_1 = arith.constant 0 : i32
    return %arg0, %arg1, %c0_i32, %c0_i32_0 : i32, i32, i32, i32
  }
  func.func @transform_5(%arg0: i32, %arg1: i32) -> (i32, i32, i32, i32) {
    %c0_i32 = arith.constant 0 : i32
    %c0_i32_0 = arith.constant 0 : i32
    %c0_i32_1 = arith.constant 0 : i32
    return %arg0, %arg1, %c0_i32, %c0_i32_0 : i32, i32, i32, i32
  }
}

</mosaic_0001>

<bundles_post_ra>
// kernel: tpu_custom_call.1
= control target key start
LH: loop header
LB: loop body
LE: loop exit
PB: predicated region body
PF: predicated region fallthrough
CT: control target
= control target key end

     0   :  { %s1688_s0 = inlined_call_operand.hbm [shape: bf16[2,4,16,16], index: 0, kind: input, shape index: {}]   ;;  %s1689_s1 = inlined_call_operand.hbm [shape: bf16[2,4,16,16], index: 1, kind: input, shape index: {}]   ;;  %s1690_s2 = inlined_call_operand.hbm [shape: bf16[2,4,16,16], index: 2, kind: input, shape index: {}]   ;;  %s1691_s3 = inlined_call_operand.hbm [shape: bf16[2,4,16,16], index: 3, kind: input, shape index: {}]   ;;  %s1692_s4 = inlined_call_operand.hbm [shape: f32[2,4,16,16], index: 4, kind: output, shape index: {0}]   ;;  %s1693_s5 = inlined_call_operand.hbm [shape: f32[2,4,16,16], index: 5, kind: output, shape index: {1}]  }
   0x1   :  { %1706 = sst [smem:[#allocation25_spill]] %s1688_s0 }
   0x2   :  { %1707 = sst [smem:[#allocation26_spill]] %s1689_s1 }
   0x3   :  { %11 = vsyncpa [#allocation3], 0 }
   0x4   :  { %13 = vsyncpa [#allocation3 + $0x1], 0 }
   0x5   :  { %14 = vsyncpa [#allocation6], 0 }
   0x6   :  { %16 = vsyncpa [#allocation6 + $0x1], 0 }
   0x7   :  { %17 = vsyncpa [#allocation9], 0 }
   0x8   :  { %19 = vsyncpa [#allocation9 + $0x1], 0 }
   0x9   :  { %20 = vsyncpa [#allocation4], 0 }
   0xa   :  { %22 = vsyncpa [#allocation4 + $0x1], 0 }
   0xb   :  { %23 = vsyncpa [#allocation12], 0 }
   0xc   :  { %25 = vsyncpa [#allocation12 + $0x1], 0  ;;  %s1280_s18 = smov 0   ;;  %s1282_s19 = smov 0  }
   0xd   :  { %s1284_s20 = smov 0   ;;  %s1286_s21 = smov 0  }
   0xe   :  { %s1288_s22 = smov 0   ;;  %s1290_s23 = smov 0  }
   0xf   :  { %s1292_s24 = smov 0   ;;  %s1294_s25 = smov 0  }
  0x10 LB: > { %1708 = sst [smem:[#allocation18_spill]] %s1216_s20  ;;  %s1321_s26 = sadd.s32 4294967295, %s1236_s25   ;;  %s1236_s25 = sphi %s1294_s25, %s31_s25   ;;  %s1232_s24 = sphi %s1292_s24, %s1737_s24   ;;  %s1228_s23 = sphi %s1290_s23, %s1736_s23   ;;  %s1224_s22 = sphi %s1288_s22, %s1735_s22   ;;  %s1220_s21 = sphi %s1286_s21, %s1734_s21   ;;  %s1216_s20 = sphi %s1284_s20, %s1733_s20   ;;  %s1212_s19 = sphi %s1282_s19, %s1739_s19   ;;  %s1208_s18 = sphi %s1280_s18, %s1738_s18  }
  0x11   : > { %1709 = sst [smem:[#allocation19_spill]] %s1228_s23  ;;  %s800_s27 = sadd.s32 4294967294, %s1236_s25  }
  0x12   : > { %1710 = sst [smem:[#allocation20_spill]] %s1232_s24  ;;  %s40_s28 = sadd.s32 1, %s1228_s23 }
  0x13   : > { %s43_s29 = sadd.s32 1, %s1232_s24  ;;  %p41_p0 = scmp.ge.s32.totalorder %s40_s28, 4 }
  0x14   : > { %s52_s30 = sadd.s32 1, %s1216_s20  ;;  %p59_p1 = scmp.ne.s32.totalorder %s1216_s20, %s1212_s19 }
  0x15   : > { %p60_p2 = scmp.eq.s32.totalorder %s1236_s25, 0  ;;  %s1741_s28 = smov (%p41_p0, %s40_s28), 0 }
  0x16   : > { %1711 = sst [smem:[#allocation21_spill]] %s1741_s28  ;;  %s1743_s29 = smov (!%p41_p0, %s43_s29), %s1232_s24 }
  0x17   : > { %s48_s6 = ssub.s32 %s1228_s23, %s1741_s28  ;;  %p1335_p3 = por %p60_p2, %p59_p1 }
  0x18   : > { %p45_p4 = scmp.ge.s32.totalorder %s1743_s29, 2  ;;  %p65_p5 = scmp.ne.s32.totalorder %s1212_s19, %s1208_s18 }
  0x19   : > { %p66_p6 = scmp.eq.s32.totalorder %s1321_s26, 0  ;;  %p175_p7 = scmp.eq.s32.totalorder %s1321_s26, 7 }
  0x1a   : > { %s1745_s29 = smov (%p45_p4, %s1743_s29), 0  ;;  %p181_p10 = scmp.eq.s32.totalorder %s800_s27, 7 }
  0x1b   : > { %1713 = sst [smem:[#allocation22_spill]] %s1745_s29  ;;  %p1345_p8 = por %p66_p6, %p65_p5 }
  0x1c   : > { %p1349_p9 = por %p175_p7, %p59_p1  ;;  %s47_s10 = ssub.s32 %s1232_s24, %s1745_s29 }
  0x1d   : > { %s1714_s8 = scalar_select %p1345_p8, 1, 0 }
  0x1e   : > { %s1715_s9 = scalar_select %p1349_p9, 1, 0 }
  0x1f   : > { %s49_s11 = sor.u32 %s48_s6, %s47_s10  ;;  %p1355_p12 = por %p181_p10, %p65_p5 }
  0x20   : > { %p50_p11 = scmp.eq.s32.totalorder %s49_s11, 0  ;;  %p896_p13 = scmp.lt.s32.totalorder %s1236_s25, 8 }
  0x21   : > { %s1716_s12 = scalar_select %p1355_p12, 1, 0 }
  0x22   : > { %s1361_s13 = sand.u32 1, %s1216_s20   ;;  %s804_s16 = sshll.u32 %s1228_s23, 1 }
  0x23   : > { %1717 = sst [smem:[#allocation23_spill]] %s1716_s12  ;;  %s1367_s15 = sshll.u32 %s1361_s13, 3 }
  0x24   : > { %s1364_s14 = scalar_select %p50_p11, %s1216_s20, %s52_s30  }
  0x25   : > { %s805_s17 = sshll.u32 %s1232_s24, 3  ;;  %p1373_p0 = pnand %p896_p13, %p1335_p3 }
  0x26   : > { %1718 = sst [smem:[#allocation24_spill]] %s1364_s14  ;;  %s239_s6 = sadd.s32 %s805_s17, %s804_s16 }
  0x27   : > { %s1377_s10 = sshll.u32 %s239_s6, 6  ;;  %s252_s11 = sand.u32 1, %s1236_s25  }
  0x28   : > { %s1720_s1 = sld [smem:[#allocation26_spill]]  ;;  %s256_s7 = scalar_lea.vmem [#allocation5], %s1367_s15 }
  0x29   : > { %s265_s24 = sshll.u32 %s256_s7, 4  ;;  %s1390_s23 = scalar_lea.sflag [#allocation6], %s252_s11  ;;  %s1387_s24 = int_to_ptr.vmem [resolvable:$true] %s265_s24 }
  0x2a   : > { %p1396_p3 = pneg %p1373_p0 }
  0x2e   : > { %s1384_s30 = scalar_lea.hbm %s1720_s1, %s1377_s10  ;;  %s983_s6 = scalar_lea.hbm %s1720_s1, 1024 }
  0x2f   : > { %s978_s16 = scalar_lea.hbm %s1384_s30, 128  ;;  %p984_p6 = scmp.lt.u32.totalorder %s1384_s30, %s1720_s1 }
  0x30   : > { %p979_p2 = scmp.ne.s32.totalorder %s1384_s30, %s978_s16  ;;  %p985_p7 = scmp.lt.u32.totalorder %s983_s6, %s978_s16 }
  0x31   : > { %p987_p11 = scmp.lt.u32.totalorder %s978_s16, %s1384_s30 }
  0x32   : > { %p981_p4 = pnand %p1396_p3, %p979_p2  ;;  %p986_p10 = por %p985_p7, %p984_p6 }
  0x34   : > { %p982_p5 = pneg %p981_p4  ;;  %p988_p13 = por %p987_p11, %p986_p10 }
  0x36   : > { %p989_p1 = pnand %p988_p13, %p982_p5 }
  0x38   : > { %992 = shalt.err (!%p989_p1)
}
  0x39   : > { %s993_s11 = scalar_lea.vmem %s1387_s24, 128  ;;  %s1238_s28 = smov [#allocation5]  }
  0x3a   : > { %p994_p2 = scmp.ne.s32.totalorder %s1387_s24, %s993_s11  ;;  %s998_s29 = sshll.u32 %s1238_s28, 4  ;;  %s999_s29 = int_to_ptr.vmem [resolvable:$false] %s998_s29 }
  0x3b   : > { %s1000_s14 = scalar_lea.vmem %s999_s29, 256  ;;  %p1001_p9 = scmp.lt.s32.totalorder %s1387_s24, %s999_s29 }
  0x3c   : > { %p996_p4 = pnand %p994_p2, %p1396_p3  ;;  %p1002_p8 = scmp.lt.s32.totalorder %s1000_s14, %s993_s11 }
  0x3e   : > { %p997_p12 = pneg %p996_p4  ;;  %p1003_p6 = por %p1002_p8, %p1001_p9 }
  0x40   : > { %p1004_p7 = pnand %p1003_p6, %p997_p12 }
  0x42   : > { %1007 = shalt.err (!%p1004_p7)
}
  0x43   : > { %s1700_s16 = smov 64   ;;  %s1702_s6 = smov 4  }
  0x44   : > { %882 = dma.hbm_to_vmem [thread:$0]  (!%p1373_p0), %s1384_s30, 128, %s1387_s24, %s1390_s23, %s1700_s16, %s1700_s16, %s1702_s6  }
  0x45   : > { %p319_p8 = scmp.lt.s32.totalorder %s1236_s25, 9  ;;  %p1722_p9 = scmp.ge.s32.totalorder %s1236_s25, 1 }
  0x46   : > { %s1724_s0 = sld [smem:[#allocation25_spill]]  ;;  %s233_s14 = scalar_lea.vmem [#allocation2], %s1367_s15 }
  0x47   : > { %p1426_p12 = pnand %p1722_p9, %p319_p8  ;;  %s242_s1 = sshll.u32 %s233_s14, 4  ;;  %s1437_s1 = int_to_ptr.vmem [resolvable:$true] %s242_s1 }
  0x48   : > { %s230_s24 = scalar_lea.sflag [#allocation3], %s1361_s13 }
  0x49   : > { %s1723_s7 = scalar_select %p1426_p12, 1, 0 }
  0x4c   : > { %s1434_s29 = scalar_lea.hbm %s1724_s0, %s1377_s10  ;;  %s1013_s11 = scalar_lea.hbm %s1724_s0, 1024 }
  0x4d   : > { %s1008_s30 = scalar_lea.hbm %s1434_s29, 128  ;;  %p1014_p11 = scmp.lt.u32.totalorder %s1434_s29, %s1724_s0 }
  0x4e   : > { %p1009_p1 = scmp.ne.s32.totalorder %s1434_s29, %s1008_s30  ;;  %p1015_p13 = scmp.lt.u32.totalorder %s1013_s11, %s1008_s30 }
  0x4f   : > { %p1017_p4 = scmp.lt.u32.totalorder %s1008_s30, %s1434_s29 }
  0x50   : > { %p1011_p5 = pnand %p1009_p1, %p1396_p3  ;;  %p1016_p2 = por %p1015_p13, %p1014_p11 }
  0x52   : > { %p1012_p10 = pneg %p1011_p5  ;;  %p1018_p6 = por %p1017_p4, %p1016_p2 }
  0x54   : > { %p1019_p7 = pnand %p1018_p6, %p1012_p10 }
  0x56   : > { %1022 = shalt.err (!%p1019_p7)
}
  0x57   : > { %s1023_s14 = scalar_lea.vmem %s1437_s1, 128  ;;  %s1241_s16 = smov [#allocation2]  }
  0x58   : > { %p1024_p8 = scmp.ne.s32.totalorder %s1437_s1, %s1023_s14  ;;  %s1028_s6 = sshll.u32 %s1241_s16, 4  ;;  %s1029_s6 = int_to_ptr.vmem [resolvable:$false] %s1028_s6 }
  0x59   : > { %s1030_s20 = scalar_lea.vmem %s1029_s6, 256  ;;  %p1031_p5 = scmp.lt.s32.totalorder %s1437_s1, %s1029_s6 }
  0x5a   : > { %p1026_p9 = pnand %p1024_p8, %p1396_p3  ;;  %p1032_p12 = scmp.lt.s32.totalorder %s1030_s20, %s1023_s14 }
  0x5c   : > { %p1027_p1 = pneg %p1026_p9  ;;  %p1033_p11 = por %p1032_p12, %p1031_p5 }
  0x5e   : > { %p1034_p13 = pnand %p1033_p11, %p1027_p1 }
  0x60   : > { %1037 = shalt.err (!%p1034_p13)
}
  0x61   : > { %s1725_s30 = smov 4   ;;  %s1726_s11 = smov 64  }
  0x62   : > { %879 = dma.hbm_to_vmem [thread:$0]  (!%p1373_p0), %s1434_s29, 128, %s1437_s1, %s230_s24, %s1726_s11, %s1726_s11, %s1725_s30  }
  0x63   : > { %s1470_s14 = scalar_lea.hbm %s1690_s2, %s1377_s10  ;;  %s279_s6 = scalar_lea.vmem [#allocation7], %s1367_s15 }
  0x64   : > { %s288_s20 = sshll.u32 %s279_s6, 4  ;;  %s1038_s0 = scalar_lea.hbm %s1470_s14, 128  ;;  %s1473_s20 = int_to_ptr.vmem [resolvable:$true] %s288_s20 }
  0x65   : > { %p1039_p12 = scmp.ne.s32.totalorder %s1470_s14, %s1038_s0  ;;  %s1043_s29 = scalar_lea.hbm %s1690_s2, 1024 }
  0x66   : > { %p1044_p4 = scmp.lt.u32.totalorder %s1470_s14, %s1690_s2  ;;  %p1045_p6 = scmp.lt.u32.totalorder %s1043_s29, %s1038_s0 }
  0x67   : > { %p1041_p10 = pnand %p1039_p12, %p1396_p3  ;;  %p1047_p8 = scmp.lt.u32.totalorder %s1038_s0, %s1470_s14 }
  0x68   : > { %p1046_p7 = por %p1045_p6, %p1044_p4 }
  0x69   : > { %p1042_p2 = pneg %p1041_p10 }
  0x6a   : > { %p1048_p9 = por %p1047_p8, %p1046_p7 }
  0x6c   : > { %p1049_p1 = pnand %p1048_p9, %p1042_p2 }
  0x6e   : > { %1052 = shalt.err (!%p1049_p1)
}
  0x6f   : > { %s1053_s16 = scalar_lea.vmem %s1473_s20, 128  ;;  %s1242_s12 = smov [#allocation7]  }
  0x70   : > { %p1054_p5 = scmp.ne.s32.totalorder %s1473_s20, %s1053_s16  ;;  %s1058_s6 = sshll.u32 %s1242_s12, 4  ;;  %s1059_s6 = int_to_ptr.vmem [resolvable:$false] %s1058_s6 }
  0x71   : > { %s1060_s1 = scalar_lea.vmem %s1059_s6, 256  ;;  %p1061_p12 = scmp.lt.s32.totalorder %s1473_s20, %s1059_s6 }
  0x72   : > { %p1056_p11 = pnand %p1054_p5, %p1396_p3  ;;  %p1062_p10 = scmp.lt.s32.totalorder %s1060_s1, %s1053_s16 }
  0x74   : > { %p1057_p13 = pneg %p1056_p11  ;;  %p1063_p4 = por %p1062_p10, %p1061_p12 }
  0x76   : > { %p1064_p6 = pnand %p1063_p4, %p1057_p13 }
  0x78   : > { %1067 = shalt.err (!%p1064_p6)
}
  0x79   : > { %885 = dma.hbm_to_vmem [thread:$0]  (!%p1373_p0), %s1470_s14, 128, %s1473_s20, %s1390_s23, %s1726_s11, %s1726_s11, %s1725_s30  }
  0x7a   : > { %s1504_s24 = scalar_lea.hbm %s1691_s3, %s1377_s10  ;;  %s302_s28 = scalar_lea.vmem [#allocation8], %s1367_s15 }
  0x7b   : > { %s311_s16 = sshll.u32 %s302_s28, 4  ;;  %s299_s12 = scalar_lea.sflag [#allocation9], %s1361_s13  ;;  %s1507_s16 = int_to_ptr.vmem [resolvable:$true] %s311_s16 }
  0x7c   : > { %s1068_s6 = scalar_lea.hbm %s1504_s24, 128  ;;  %s1073_s20 = scalar_lea.hbm %s1691_s3, 1024 }
  0x7d   : > { %p1069_p2 = scmp.ne.s32.totalorder %s1504_s24, %s1068_s6  ;;  %p1074_p9 = scmp.lt.u32.totalorder %s1504_s24, %s1691_s3 }
  0x7e   : > { %p1075_p1 = scmp.lt.u32.totalorder %s1073_s20, %s1068_s6  ;;  %p1077_p11 = scmp.lt.u32.totalorder %s1068_s6, %s1504_s24 }
  0x7f   : > { %p1071_p7 = pnand %p1069_p2, %p1396_p3 }
  0x80   : > { %p1076_p5 = por %p1075_p1, %p1074_p9 }
  0x81   : > { %p1072_p8 = pneg %p1071_p7 }
  0x82   : > { %p1078_p13 = por %p1077_p11, %p1076_p5 }
  0x84   : > { %p1079_p12 = pnand %p1078_p13, %p1072_p8 }
  0x86   : > { %1082 = shalt.err (!%p1079_p12)
}
  0x87   : > { %s1083_s15 = scalar_lea.vmem %s1507_s16, 128  ;;  %s1243_s0 = smov [#allocation8]  }
  0x88   : > { %p1084_p10 = scmp.ne.s32.totalorder %s1507_s16, %s1083_s15  ;;  %s1088_s29 = sshll.u32 %s1243_s0, 4  ;;  %s1089_s29 = int_to_ptr.vmem [resolvable:$false] %s1088_s29 }
  0x89   : > { %s1090_s28 = scalar_lea.vmem %s1089_s29, 256  ;;  %p1091_p2 = scmp.lt.s32.totalorder %s1507_s16, %s1089_s29 }
  0x8a   : > { %p1086_p4 = pnand %p1084_p10, %p1396_p3  ;;  %p1092_p7 = scmp.lt.s32.totalorder %s1090_s28, %s1083_s15 }
  0x8c   : > { %p1087_p6 = pneg %p1086_p4  ;;  %p1093_p9 = por %p1092_p7, %p1091_p2 }
  0x8e   : > { %p1094_p1 = pnand %p1093_p9, %p1087_p6 }
  0x90   : > { %1097 = shalt.err (!%p1094_p1)
}
  0x91   : > { %888 = dma.hbm_to_vmem [thread:$0]  (!%p1373_p0), %s1504_s24, 128, %s1507_s16, %s299_s12, %s1726_s11, %s1726_s11, %s1725_s30  }
  0x92   : > { %p1727_p3 = scmp.ne.s32.totalorder %s1723_s7, 0 }
  0x93   : > { %s1539_s17 = sand.u32 (!%p1727_p3), 1, %s1212_s19   ;;  %p1728_p8 = scmp.ne.s32.totalorder (!%p1727_p3), %s1714_s8, 0 }
  0x94   : > { %323 = sbr.rel (%p1727_p3) target bundleno = 940 (0x3ac), region = 36  ;;  %s1542_s6 = sshll.u32 (!%p1727_p3), %s1539_s17, 3 }
  0x95   : > { %s326_s27 = scalar_lea.sflag (!%p1727_p3), [#allocation3], %s1539_s17  ;;  %s329_s23 = scalar_lea.vmem (!%p1727_p3), [#allocation2], %s1542_s6 }
  0x9b   : > { %1187 = dma.done.wait (%p1728_p8), %s326_s27, 128  }
  0x9c   : > { %1189 = vsyncadd (%p1728_p8), %s326_s27, 4294967168  ;;  %s334_s13 = sand.u32 1, %s1321_s26   ;;  %s338_s30 = scalar_lea.vmem [#allocation5], %s1542_s6 }
  0x9d   : > { %s335_s7 = scalar_lea.sflag [#allocation6], %s334_s13 }
  0x9e   : > { %1191 = dma.done.wait (%p1728_p8), %s335_s7, 256  }
  0x9f   : > { %1193 = vsyncadd (%p1728_p8), %s335_s7, 4294967040  ;;  %s347_s11 = scalar_lea.vmem [#allocation7], %s1542_s6  ;;  %s353_s24 = scalar_lea.sflag [#allocation9], %s1539_s17 }
  0xa0   : > { %s356_s16 = scalar_lea.vmem [#allocation8], %s1542_s6 }
  0xa1   : > { %1195 = dma.done.wait (%p1728_p8), %s353_s24, 128  }
  0xa2   : > { %1197 = vsyncadd (%p1728_p8), %s353_s24, 4294967168  ;;  %v1244_v0 = vmov 0.0   ;;  %vm1245_vm0 = vmmov 0   ;;  %v841_v1 = vld [vmem:[%s338_s30] sm:$0xff]   ;;  %v845_v2 = vld [vmem:[%s347_s11] sm:$0xff]   ;;  %vm424_vm1 = vcmask 130048   ;;  %v472_v14 = vlaneseq }
  0xa3   : > { %852 = vmatprep.subr.bf16.mxu0 %v1244_v0  ;;  %854 = vmatprep.mubr.msk.bf16.mxu0 %vm1245_vm0, %v1244_v0  ;;  %v842_v3 = vunpack.c.l.bf16 %v841_v1  ;;  %v843_v4 = vunpack.c.h.bf16 %v841_v1  ;;  %v846_v5 = vunpack.c.l.bf16 %v845_v2  ;;  %v847_v6 = vunpack.c.h.bf16 %v845_v2  ;;  %v968_v13 = vld [vmem:[%s329_s23] sm:$0xff]   ;;  %v969_v36 = vld [vmem:[%s356_s16] sm:$0xff]   ;;  %s824_s26 = sshll.u32 %s1539_s17, 4  ;;  %s832_s12 = sshll.u32 %s1220_s21, 1 }
  0xa4   : > { %858 = vmatprep.subr.bf16.mxu1 %v1244_v0  ;;  %860 = vmatprep.mubr.msk.bf16.mxu1 %vm1245_vm0, %v1244_v0  ;;  %v473_v15 = vshrl.u32 %v472_v14, 7  ;;  %v476_v16 = vand.u32 127, %v472_v14  ;;  %s402_s8 = scalar_lea.vmem [#allocation11], %s824_s26  ;;  %s833_s14 = sshll.u32 %s1224_s22, 3 }
  0xa5   : > { %v414_v7 = vadd.f32 %v846_v5, %v842_v3  ;;  %v415_v8 = vadd.f32 %v847_v6, %v843_v4  ;;  %859 = vmatpush3.bf16.msra.mxu1 %v969_v36  ;;  %s599_s20 = sshll.u32 %s402_s8, 4  ;;  %s1583_s10 = sadd.s32 %s833_s14, %s832_s12  ;;  %s1581_s20 = int_to_ptr.vmem [resolvable:$true] %s599_s20 }
  0xa6   : > { %v474_v17 = vadd.s32 8, %v473_v15  ;;  %vm477_vm2 = vcmp.le.s32.totalorder %v476_v16, %v473_v15  ;;  %s834_s1 = sshll.u32 %s1583_s10, 7  ;;  %s566_s28 = scalar_lea.sflag [#allocation12], %s1539_s17 }
  0xa7   : > { %v416_v9 = vmul.f32 0.25, %v414_v7  ;;  %v417_v10 = vmul.f32 0.25, %v415_v8  ;;  %s1591_s29 = scalar_lea.hbm %s1693_s5, %s834_s1  ;;  %s1098_s21 = scalar_lea.vmem %s1581_s20, 256 }
  0xa8   : > { %vm478_vm3 = vcmp.le.s32.totalorder %v476_v16, %v474_v17  ;;  %p1099_p0 = scmp.ne.s32.totalorder %s1581_s20, %s1098_s21  ;;  %p1729_p5 = scmp.ne.s32.totalorder %s1715_s9, 0 }
  0xa9   : > { %v418_v11 = vpack.c.bf16 %v417_v10, %v416_v9  ;;  %s1246_s22 = smov [#allocation11]  }
  0xaa   : > { %p1100_p11 = pnand %p1099_p0, %p1729_p5  ;;  %s1102_s6 = sshll.u32 %s1246_s22, 4  ;;  %s1103_s6 = int_to_ptr.vmem [resolvable:$false] %s1102_s6 }
  0xab   : > { %v429_v12 = vsel %vm424_vm1, %v418_v11, 0  ;;  %s1104_s27 = scalar_lea.vmem %s1103_s6, 512  ;;  %p1105_p12 = scmp.lt.s32.totalorder %s1581_s20, %s1103_s6 }
  0xac   : > { %853 = vmatpush3.bf16.xpose.msra.mxu0 %v429_v12  ;;  %p1101_p13 = pneg %p1100_p11  ;;  %p1106_p10 = scmp.lt.s32.totalorder %s1104_s27, %s1098_s21 }
  0xae   : > { %p1107_p4 = por %p1106_p10, %p1105_p12 }
  0xb0   : > { %p1108_p6 = pnand %p1107_p4, %p1101_p13 }
  0xb3   : > { %855 = vmatmul.mubr.msk.bf16.vlgmr.msra.gmra.mrb[0].mxu0 %vm424_vm1, %v968_v13 }
 0x186   : > { %v465_v18 = vpop.f32.mrb[0].mxu0 }
 0x187   : > { %v479_v19 = vsel %vm477_vm2, %v465_v18, -1e+10  ;;  %v856_v20 = vpop.f32.mrb[1].mxu0 }
 0x188   : > { %v468_v21 = vpop.f32.mrb[2].mxu0  ;;  %v481_v22 = vsel %vm424_vm1, %v479_v19, -inf }
 0x189   : > { %v480_v23 = vsel %vm478_vm3, %v468_v21, -1e+10  ;;  %482 = vmax.xlane.f32.xlu0 %v481_v22  ;;  %v857_v24 = vpop.f32.mrb[3].mxu0 }
 0x18a   : > { %v484_v25 = vsel %vm424_vm1, %v480_v23, -inf }
 0x18d   : > { %485 = vmax.xlane.f32.xlu0 %v484_v25 }
 0x216   : > { %v483_v26 = vpop.xlane.xlu0 %482 }
 0x217   : > { %v487_v27 = vsub.f32 %v479_v19, %v483_v26 }
 0x219   : > { %v489_v28 = vmul.f32 1.442695, %v487_v27 }
 0x21a   : > { %v486_v29 = vpop.xlane.xlu0 %485 }
 0x21b   : > { %970 = vpow2.f32 %v489_v28  ;;  %v488_v30 = vsub.f32 %v480_v23, %v486_v29 }
 0x21d   : > { %v491_v31 = vmul.f32 1.442695, %v488_v30 }
 0x21f   : > { %972 = vpow2.f32 %v491_v31 }
 0x225   : > { %v971_v32 = vpop.eup %970 }
 0x226   : > { %v493_v33 = vsel %vm424_vm1, %v971_v32, 0.0 }
 0x227   : > { %494 = vadd.xlane.f32.xlu1 %v493_v33 }
 0x229   : > { %v973_v34 = vpop.eup %972 }
 0x22a   : > { %v496_v35 = vsel %vm424_vm1, %v973_v34, 0.0 }
 0x22b   : > { %497 = vadd.xlane.f32.xlu1 %v496_v35 }
 0x2b4   : > { %v495_v37 = vpop.xlane.xlu1 %494 }
 0x2b5   : > { %974 = vrcp.f32 %v495_v37 }
 0x2b8   : > { %v498_v38 = vpop.xlane.xlu1 %497 }
 0x2b9   : > { %976 = vrcp.f32 %v498_v38 }
 0x2bf   : > { %v975_v39 = vpop.eup %974 }
 0x2c0   : > { %v501_v40 = vmul.f32 %v975_v39, %v971_v32 }
 0x2c2   : > { %503 = vst.msk [vmem:[%s402_s8] sm:$0xff] %vm424_vm1, %v501_v40 }
 0x2c3   : > { %v977_v41 = vpop.eup %976 }
 0x2c4   : > { %v502_v42 = vmul.f32 %v977_v41, %v973_v34 }
 0x2c6   : > { %v505_v43 = vpack.c.bf16 %v502_v42, %v501_v40  ;;  %504 = vst.msk [vmem:[%s402_s8 + $0x8] sm:$0xff] %vm424_vm1, %v502_v42 }
 0x2c8   : > { %861 = vmatmul.mubr.msk.bf16.vlgmr.msra.gmra.mrb[0].mxu1 %vm424_vm1, %v505_v43 }
 0x2c9   : > { %1111 = shalt.err (!%p1108_p6)
}
 0x2ca   : > { %s1112_s23 = scalar_lea.hbm %s1591_s29, 256  ;;  %s1116_s30 = scalar_lea.hbm %s1693_s5, 2048 }
 0x2cb   : > { %p1113_p2 = scmp.ne.s32.totalorder %s1591_s29, %s1112_s23  ;;  %p1117_p1 = scmp.lt.u32.totalorder %s1591_s29, %s1693_s5 }
 0x2cc   : > { %p1118_p3 = scmp.lt.u32.totalorder %s1116_s30, %s1112_s23  ;;  %p1120_p0 = scmp.lt.u32.totalorder %s1112_s23, %s1591_s29 }
 0x2cd   : > { %p1114_p7 = pnand %p1113_p2, %p1729_p5 }
 0x2ce   : > { %p1119_p8 = por %p1118_p3, %p1117_p1 }
 0x2cf   : > { %p1115_p9 = pneg %p1114_p7 }
 0x2d0   : > { %p1121_p11 = por %p1120_p0, %p1119_p8 }
 0x2d2   : > { %p1122_p13 = pnand %p1121_p11, %p1115_p9 }
 0x2d4   : > { %1125 = shalt.err (!%p1122_p13)
}
 0x2d5   : > { %s1247_s16 = smov 128   ;;  %s1248_s8 = smov 8  }
 0x2d6   : > { %873 = dma.vmem_to_hbm [thread:$0]  (%p1729_p5), %s1581_s20, 256, %s1591_s29, %s566_s28, %s1247_s16, %s1247_s16, %s1248_s8  }
 0x2d7   : > { %s395_s12 = scalar_lea.vmem [#allocation10], %s824_s26  ;;  %s1630_s21 = scalar_lea.hbm %s1692_s4, %s834_s1 }
 0x2d8   : > { %s581_s14 = sshll.u32 %s395_s12, 4  ;;  %s561_s26 = scalar_lea.sflag [#allocation4], %s1539_s17  ;;  %s1622_s14 = int_to_ptr.vmem [resolvable:$true] %s581_s14 }
 0x2d9   : > { %s1126_s20 = scalar_lea.vmem %s1622_s14, 256  ;;  %s1249_s29 = smov [#allocation10]  }
 0x2da   : > { %p1127_p12 = scmp.ne.s32.totalorder %s1622_s14, %s1126_s20  ;;  %s1130_s28 = sshll.u32 %s1249_s29, 4  ;;  %s1131_s28 = int_to_ptr.vmem [resolvable:$false] %s1130_s28 }
 0x2db   : > { %s1132_s22 = scalar_lea.vmem %s1131_s28, 512  ;;  %p1133_p6 = scmp.lt.s32.totalorder %s1622_s14, %s1131_s28 }
 0x2dc   : > { %p1128_p10 = pnand %p1127_p12, %p1729_p5  ;;  %p1134_p2 = scmp.lt.s32.totalorder %s1132_s22, %s1126_s20 }
 0x2de   : > { %p1129_p4 = pneg %p1128_p10  ;;  %p1135_p7 = por %p1134_p2, %p1133_p6 }
 0x2e0   : > { %p1136_p9 = pnand %p1135_p7, %p1129_p4 }
 0x39b   : > { %v551_v44 = vpop.f32.mrb[0].mxu1 }
 0x39c   : > { %558 = vst.msk [vmem:[%s395_s12] sm:$0xff] %vm424_vm1, %v551_v44  ;;  %v862_v45 = vpop.f32.mrb[1].mxu1 }
 0x39d   : > { %v554_v46 = vpop.f32.mrb[2].mxu1 }
 0x39e   : > { %559 = vst.msk [vmem:[%s395_s12 + $0x8] sm:$0xff] %vm424_vm1, %v554_v46  ;;  %v863_v47 = vpop.f32.mrb[3].mxu1 }
 0x39f   : > { %1139 = shalt.err (!%p1136_p9)
}
 0x3a0   : > { %s1140_s10 = scalar_lea.hbm %s1630_s21, 256  ;;  %s1144_s27 = scalar_lea.hbm %s1692_s4, 2048 }
 0x3a1   : > { %p1141_p1 = scmp.ne.s32.totalorder %s1630_s21, %s1140_s10  ;;  %p1145_p0 = scmp.lt.u32.totalorder %s1630_s21, %s1692_s4 }
 0x3a2   : > { %p1146_p11 = scmp.lt.u32.totalorder %s1144_s27, %s1140_s10  ;;  %p1148_p12 = scmp.lt.u32.totalorder %s1140_s10, %s1630_s21 }
 0x3a3   : > { %p1142_p3 = pnand %p1141_p1, %p1729_p5 }
 0x3a4   : > { %p1147_p13 = por %p1146_p11, %p1145_p0 }
 0x3a5   : > { %p1143_p8 = pneg %p1142_p3 }
 0x3a6   : > { %p1149_p10 = por %p1148_p12, %p1147_p13 }
 0x3a8   : > { %p1150_p4 = pnand %p1149_p10, %p1143_p8 }
 0x3aa   : > { %1153 = shalt.err (!%p1150_p4)
}
 0x3ab   : > { %872 = dma.vmem_to_hbm [thread:$0]  (%p1729_p5), %s1622_s14, 256, %s1630_s21, %s561_s26, %s1247_s16, %s1247_s16, %s1248_s8  }
 0x3ac PF: > { %s1730_s7 = sld [smem:[#allocation23_spill]]  ;;  %p897_p6 = scmp.ge.s32.totalorder %s1236_s25, 2 }
 0x3ad   : > { %s614_s30 = sand.u32 1, %s1208_s18  }
 0x3ae   : > { %s615_s11 = scalar_lea.sflag [#allocation4], %s614_s30 }
 0x3b2   : > { %p1731_p2 = scmp.ne.s32.totalorder %s1730_s7, 0 }
 0x3b4   : > { %p890_p7 = pnand %p897_p6, %p1731_p2 }
 0x3b6   : > { %1199 = dma.done.wait (!%p890_p7), %s615_s11, 256  }
 0x3b7   : > { %1201 = vsyncadd (!%p890_p7), %s615_s11, 4294967040  ;;  %s624_s9 = scalar_lea.sflag [#allocation12], %s614_s30 }
 0x3b8   : > { %1203 = dma.done.wait (!%p890_p7), %s624_s9, 256  }
 0x3b9   : > { %1205 = vsyncadd (!%p890_p7), %s624_s9, 4294967040  ;;  %s31_s25 = sadd.s32 1, %s1236_s25   ;;  %s1732_s17 = sld [smem:[#allocation18_spill]] }
 0x3ba   : > { %p28_p9 = scmp.ge.s32.totalorder %s31_s25, 10   ;;  %s1733_s20 = sld [smem:[#allocation24_spill]] }
 0x3bb   : > { %s1734_s21 = sld [smem:[#allocation19_spill]]  ;;  %s1735_s22 = sld [smem:[#allocation20_spill]] }
 0x3bc   : > { %s1736_s23 = sld [smem:[#allocation21_spill]]  ;;  %s1737_s24 = sld [smem:[#allocation22_spill]] }
 0x3bd   : > { %s1738_s18 = smov %s1212_s19  ;;  %30 = sbr.rel (!%p28_p9) target bundleno = 16 (0x10), region = 135 }
 0x3bf   : > { %s1739_s19 = smov %s1732_s17 }
 0x3c4   :  { %629 = vsyncpa [#allocation3], 1 }
 0x3c5   :  { %631 = vsyncpa [#allocation3 + $0x1], 1 }
 0x3c6   :  { %632 = vsyncpa [#allocation6], 1 }
 0x3c7   :  { %634 = vsyncpa [#allocation6 + $0x1], 1 }
 0x3c8   :  { %635 = vsyncpa [#allocation9], 1 }
 0x3c9   :  { %637 = vsyncpa [#allocation9 + $0x1], 1 }
 0x3ca   :  { %638 = vsyncpa [#allocation4], 1 }
 0x3cb   :  { %640 = vsyncpa [#allocation4 + $0x1], 1 }
 0x3cc   :  { %641 = vsyncpa [#allocation12], 1 }
 0x3cd   :  { %643 = vsyncpa [#allocation12 + $0x1], 1 }

</bundles_post_ra>
